<compile_context>
chip_gen: v6e
topology: v6e:2x2x1
jax: 0.10.0
libtpu: 0.0.40
codegen_flags: <defaults>
</compile_context>

<pallas_src>
import functools
from math import prod

import jax
import jax.numpy as jnp
from jax.experimental import pallas as pl
from jax.experimental.pallas import tpu as pltpu


def _silu(x):
    return x * jax.nn.sigmoid(x)


# ---------------------------------------------------------------------------
# Batch-independent coefficients (plain XLA, runs once / cacheable across calls)
# ---------------------------------------------------------------------------
def precompute_coef(params, *, gamma_min, gamma_max, n_features,
                    n_features_padded=None, eps=0.001):
    """(8, 2*F_pad) coefficient matrix.

    Columns [0, F_pad):   gamma(t)  = [1 t t^2 .. t^5 0 0] @ kg
                          (min_gamma folded into the constant row, 1/scale folded in)
    Columns [F_pad, 2Fp): q(t)      = [1 t t^2 .. ] @ kq,  dgamma = max(q^2, eps)
                          with kq = sqrt(mmg/scale_g) * [c, b, a, 0, ...]
    """
    F = n_features
    Fp = n_features_padded or F
    mmg = float(gamma_max - gamma_min)

    # l1(ones): ones @ W1^T + b1 == w1t + b1 (every batch row identical).
    h = _silu(params["w1t"] + params["b1"])                       # (1, F)
    h = _silu(h @ params["w2t"] + params["b2"])                   # (1, F)
    abc = h @ params["w3t"] + params["b3"]                        # (1, 3F) fused heads
    a, b = abc[:, :F], abc[:, F:2 * F]
    c = eps + jax.nn.softplus(abc[:, 2 * F:])

    r5 = a * a / 5.0
    r4 = a * b / 2.0
    r3 = (b * b + 2.0 * a * c) / 3.0
    r2 = b * c
    c2 = c * c
    scale_g = r5 + r4 + r3 + r2 + c2      # = integral_0^1 (a t^2 + b t + c)^2 dt > 0
    ms = mmg / (scale_g + eps)            # fold the 1/scale division once
    s = jnp.sqrt(mmg / scale_g)           # dgamma = (s*(a t^2 + b t + c))^2

    mins = jnp.full_like(a, float(gamma_min))
    zeros = jnp.zeros_like(a)
    kg = jnp.concatenate([mins, (c2 + eps) * ms, r2 * ms, r3 * ms, r4 * ms, r5 * ms,
                          zeros, zeros], axis=0)                  # (8, F)
    kq = jnp.concatenate([c * s, b * s, a * s, zeros, zeros, zeros, zeros, zeros],
                         axis=0)                                  # (8, F)
    pad = Fp - F
    if pad:
        kg = jnp.pad(kg, ((0, 0), (0, pad)))
        kq = jnp.pad(kq, ((0, 0), (0, pad)))
    return jnp.concatenate([kg, kq], axis=1)                      # (8, 2*Fp)


def _vandermonde(t, b_pad):
    """Rows [1, t, t^2, ..., t^5, 0, 0]; batch zero-padded to b_pad (K=8 so the
    contraction dim is exactly one f32 sublane tile)."""
    t = t.reshape(t.shape[0], 1).astype(jnp.float32)
    if t.shape[0] < b_pad:
        t = jnp.pad(t, ((0, b_pad - t.shape[0]), (0, 0)))
    t2 = t * t
    t4 = t2 * t2
    z = jnp.zeros_like(t)
    return jnp.concatenate([jnp.ones_like(t), t, t2, t2 * t, t4, t4 * t, z, z], axis=1)


# ---------------------------------------------------------------------------
# Pallas kernel: (tb,8) @ (8, 2*F_pad) on the MXU + square/max on the VPU.
# ---------------------------------------------------------------------------
def poly_kernel(v_ref, coef_ref, gamma_ref, dg_ref, *, eps):
    fp = gamma_ref.shape[-1]
    out = jnp.dot(v_ref[...], coef_ref[...], preferred_element_type=jnp.float32)
    gamma_ref[...] = out[:, :fp].astype(gamma_ref.dtype)
    q = out[:, fp:]
    dg_ref[...] = jnp.maximum(q * q, eps).astype(dg_ref.dtype)


# ---------------------------------------------------------------------------
# Tiling / VMEM budgeting
# ---------------------------------------------------------------------------
def _pick_batch_tile(B, f_pad, target_block_bytes=2 << 20, max_tile=2048):
    """F- and VMEM-aware batch tile; pads the batch so every tile is full.

    - output blocks target ~2 MiB (mem-bound kernels need 512-1024+ rows to
      approach HBM roofline; per-grid-step overhead ~0.35 us),
    - >=2 grid tiles whenever B >= 16 so the "parallel" axis feeds both v7x TCs,
    - batch padded to a multiple of 8 / of the tile instead of a single
      unpipelined full-batch block.
    """
    b8 = ((B + 7) // 8) * 8
    tb = (target_block_bytes // (f_pad * 4)) // 8 * 8
    tb = max(8, min(max_tile, tb, b8))
    if b8 >= 16:
        tb = max(8, min(tb, (b8 // 2) // 8 * 8))
    # Prefer an exact divisor of the padded batch (no wasted tail rows) when a
    # reasonably large one exists; otherwise pad the batch up to a tile multiple.
    for cand in range(tb, 7, -8):
        if b8 % cand == 0 and cand * 4 >= tb:
            tb = cand
            break
    b_pad = ((b8 + tb - 1) // tb) * tb
    return tb, b_pad


def _vmem_limit_bytes(tb, f_pad, out_itemsize):
    est = (2 * 2 * tb * f_pad * out_itemsize   # 2 outputs, double-buffered
           + 2 * tb * 128 * 4                  # (tb, 8) V blocks pad the lane dim to 128
           + 2 * 8 * 2 * f_pad * 4             # coef buffers
           + tb * 2 * f_pad * 4                # matmul result temporary
           + tb * f_pad * 4)                   # q*q temporary
    # Keep headroom below v7x's 64 MiB/TC physical VMEM (48 MiB cap).
    return int(min(48 << 20, max(32 << 20, int(est * 1.25))))


# ---------------------------------------------------------------------------
# Parameters / wrapper / reference
# ---------------------------------------------------------------------------
def init_params(key, n_features):
    """Deterministic init mimicking nn.Linear default (uniform +-1/sqrt(fan_in)).
    Weights are stored pre-transposed (h @ w_t); the three head weights are also
    stored fused along N for a single (F, 3F) matmul."""
    ks = jax.random.split(key, 10)
    F = n_features

    def lin(kw, kb, fan_in, fan_out):
        bound = 1.0 / jnp.sqrt(float(fan_in))
        w = jax.random.uniform(kw, (fan_out, fan_in), jnp.float32, -bound, bound)
        b = jax.random.uniform(kb, (fan_out,), jnp.float32, -bound, bound)
        return w.T, b.reshape(1, fan_out)

    p = {}
    p["w1t"], p["b1"] = lin(ks[0], ks[1], 1, F)
    p["w2t"], p["b2"] = lin(ks[2], ks[3], F, F)
    p["w3at"], p["b3a"] = lin(ks[4], ks[5], F, F)
    p["w3bt"], p["b3b"] = lin(ks[6], ks[7], F, F)
    p["w3ct"], p["b3c"] = lin(ks[8], ks[9], F, F)
    p["w3t"] = jnp.concatenate([p["w3at"], p["w3bt"], p["w3ct"]], axis=1)  # (F, 3F)
    p["b3"] = jnp.concatenate([p["b3a"], p["b3b"], p["b3c"]], axis=1)      # (1, 3F)
    return p


def gamma_mulan_forward(t, params, gamma_shape, gamma_min=-10.0, gamma_max=10.0,
                        coef=None, out_dtype=jnp.float32):
    """Forward pass (around_reference=False).  Pass a cached `coef` (from
    precompute_coef) to skip the coefficient chain when params are reused.
    On v5e/v6e, out_dtype=jnp.bfloat16 halves the HBM writeback traffic."""
    B = t.shape[0]
    F = prod(gamma_shape)
    eps = 0.001
    f_pad = max(128, ((F + 127) // 128) * 128)   # lane-dense (unmasked) output stores

    if coef is None:
        coef = precompute_coef(params, gamma_min=gamma_min, gamma_max=gamma_max,
                               n_features=F, n_features_padded=f_pad, eps=eps)

    tb, b_pad = _pick_batch_tile(B, f_pad)
    v = _vandermonde(t, b_pad)

    out_sds = jax.ShapeDtypeStruct((b_pad, f_pad), out_dtype)
    gamma_p, dg_p = pl.pallas_call(
        functools.partial(poly_kernel, eps=eps),
        out_shape=(out_sds, out_sds),
        grid=(b_pad // tb,),
        in_specs=[pl.BlockSpec((tb, 8), lambda i: (i, 0)),
                  # grid-invariant: same block index every step -> fetched once
                  pl.BlockSpec((8, 2 * f_pad), lambda i: (0, 0))],
        out_specs=(pl.BlockSpec((tb, f_pad), lambda i: (i, 0)),
                   pl.BlockSpec((tb, f_pad), lambda i: (i, 0))),
        compiler_params=pltpu.CompilerParams(
            dimension_semantics=("parallel",),
            vmem_limit_bytes=_vmem_limit_bytes(
                tb, f_pad, jnp.dtype(out_dtype).itemsize)),
    )(v, coef)

    gamma = gamma_p[:B, :F].reshape((B,) + tuple(gamma_shape))
    dg = dg_p[:B, :F].reshape((B,) + tuple(gamma_shape))
    return gamma, dg


def gamma_mulan_reference(t, params, gamma_shape, gamma_min=-10.0, gamma_max=10.0):
    """Pure-JAX reference mirroring the PyTorch forward (around_reference=False),
    including the full-batch ones_like(t) MLP and literal divisions."""
    B = t.shape[0]
    eps = 0.001
    mmg = float(gamma_max - gamma_min)
    x = jnp.ones_like(t)
    h = _silu(x @ params["w1t"] + params["b1"])
    h = _silu(h @ params["w2t"] + params["b2"])
    a = h @ params["w3at"] + params["b3a"]
    b = h @ params["w3bt"] + params["b3b"]
    c = 0.001 + jax.nn.softplus(h @ params["w3ct"] + params["b3c"])

    poly = (a**2 * t**5 / 5.0 + (b**2 + 2 * a * c) * t**3 / 3.0
            + a * b * t**4 / 2.0 + b * c * t**2 + (c**2 + eps) * t)
    scale = a**2 / 5.0 + (b**2 + 2 * a * c) / 3.0 + a * b / 2.0 + b * c + c**2 + eps
    gamma = gamma_min + mmg * poly / scale

    poly_g = a**2 * t**4 + (b**2 + 2 * a * c) * t**2 + a * b * t**3 * 2.0 + b * c * t * 2.0 + c**2
    scale_g = a**2 / 5.0 + (b**2 + 2 * a * c) / 3.0 + a * b / 2.0 + b * c + c**2
    dg = jnp.maximum(mmg * poly_g / scale_g, eps)

    gamma = gamma.reshape((B,) + tuple(gamma_shape))
    dg = dg.reshape((B,) + tuple(gamma_shape))
    return gamma, dg


if __name__ == "__main__":
    # TODO(synk): the around_reference=True branch (t_dir jvp + logsumexp
    # recentering) is not implemented; forward matches the default
    # around_reference=False path.
    gamma_shape = (4, 8, 8)            # n_features = 256 (lane-dense, 2*128)
    B = 2

    key = jax.random.PRNGKey(0)
    k_params, k_t = jax.random.split(key)
    params = init_params(k_params, prod(gamma_shape))
    t = jax.random.uniform(k_t, (B, 1), jnp.float32)   # diffusion time in [0,1)

    fwd = jax.jit(functools.partial(gamma_mulan_forward, gamma_shape=gamma_shape))
    gamma, dgamma = fwd(t, params)
    gamma = jax.block_until_ready(gamma)
    dgamma = jax.block_until_ready(dgamma)

    gamma_ref, dgamma_ref = gamma_mulan_reference(t, params, gamma_shape)
    assert gamma.shape == (B,) + gamma_shape
    assert dgamma.shape == (B,) + gamma_shape
    # Tolerance loosened vs the reference's literal divisions: folded 1/scale,
    # sqrt/square for dgamma, and the f32 MXU (bf16x3) matmul each add a few ulps.
    assert jnp.allclose(gamma, gamma_ref, rtol=1e-4, atol=1e-4)
    assert jnp.allclose(dgamma, dgamma_ref, rtol=1e-4, atol=1e-4)

    print("KERNEL_OK")
</pallas_src>

<mosaic_0001>
module attributes {stable_mosaic.version = 11 : i64} {
  func.func @poly_kernel(%arg0: i32, %arg1: memref<8x8xf32, #tpu.memory_space<vmem>>, %arg2: memref<8x512xf32, #tpu.memory_space<vmem>>, %arg3: memref<8x256xf32, #tpu.memory_space<vmem>>, %arg4: memref<8x256xf32, #tpu.memory_space<vmem>>) attributes {dimension_semantics = [#tpu.dimension_semantics<parallel>], iteration_bounds = array<i64: 1>, scalar_prefetch = 0 : i64, scratch_operands = 0 : i64, tpu.core_type = #tpu.core_type<tc>, window_params = [{transform_indices = @transform_0, window_bounds = array<i64: 8, 8>}, {pipeline_mode = #tpu.pipeline_mode<synchronous>, transform_indices = @transform_1, window_bounds = array<i64: 8, 512>}, {transform_indices = @transform_2, window_bounds = array<i64: 8, 256>}, {transform_indices = @transform_3, window_bounds = array<i64: 8, 256>}]} {
    %c0 = arith.constant 0 : index
    %c0_0 = arith.constant 0 : index
    %0 = vector.load %arg1[%c0, %c0_0] : memref<8x8xf32, #tpu.memory_space<vmem>>, vector<8x8xf32>
    %c0_1 = arith.constant 0 : index
    %c0_2 = arith.constant 0 : index
    %1 = vector.load %arg2[%c0_1, %c0_2] : memref<8x512xf32, #tpu.memory_space<vmem>>, vector<8x512xf32>
    %cst = arith.constant dense<0.000000e+00> : vector<8x512xf32>
    %2 = tpu.matmul %0, %1, %cst {dimension_numbers = #tpu.dot_dimension_numbers<[1], [0], [0], [1], [0, 0, 1, 1], [], []>} : vector<8x8xf32>, vector<8x512xf32>, vector<8x512xf32> -> vector<8x512xf32>
    %3 = vector.extract_strided_slice %2 {offsets = [0, 0], sizes = [8, 256], strides = [1, 1]} : vector<8x512xf32> to vector<8x256xf32>
    %c0_3 = arith.constant 0 : index
    %c0_4 = arith.constant 0 : index
    %4 = vector.load %arg3[%c0_3, %c0_4] : memref<8x256xf32, #tpu.memory_space<vmem>>, vector<8x256xf32>
    tpu.vector_store %arg3[%c0_3, %c0_4], %3 {strides = array<i32>} : memref<8x256xf32, #tpu.memory_space<vmem>>, vector<8x256xf32>,
    %5 = vector.extract_strided_slice %2 {offsets = [0, 256], sizes = [8, 256], strides = [1, 1]} : vector<8x512xf32> to vector<8x256xf32>
    %6 = arith.mulf %5, %5 : vector<8x256xf32>
    %cst_5 = arith.constant 1.000000e-03 : f32
    %7 = vector.broadcast %cst_5 : f32 to vector<8x256xf32>
    %8 = arith.maximumf %6, %7 : vector<8x256xf32>
    %c0_6 = arith.constant 0 : index
    %c0_7 = arith.constant 0 : index
    %9 = vector.load %arg4[%c0_6, %c0_7] : memref<8x256xf32, #tpu.memory_space<vmem>>, vector<8x256xf32>
    tpu.vector_store %arg4[%c0_6, %c0_7], %8 {strides = array<i32>} : memref<8x256xf32, #tpu.memory_space<vmem>>, vector<8x256xf32>,
    return
  }
  func.func @transform_0(%arg0: i32) -> (i32, i32) {
    %c0_i32 = arith.constant 0 : i32
    %c0_i32_0 = arith.constant 0 : i32
    return %arg0, %c0_i32 : i32, i32
  }
  func.func @transform_1(%arg0: i32) -> (i32, i32) {
    %c0_i32 = arith.constant 0 : i32
    %c0_i32_0 = arith.constant 0 : i32
    %c0_i32_1 = arith.constant 0 : i32
    return %c0_i32, %c0_i32_0 : i32, i32
  }
  func.func @transform_2(%arg0: i32) -> (i32, i32) {
    %c0_i32 = arith.constant 0 : i32
    %c0_i32_0 = arith.constant 0 : i32
    return %arg0, %c0_i32 : i32, i32
  }
  func.func @transform_3(%arg0: i32) -> (i32, i32) {
    %c0_i32 = arith.constant 0 : i32
    %c0_i32_0 = arith.constant 0 : i32
    return %arg0, %c0_i32 : i32, i32
  }
}

</mosaic_0001>

<bundles_post_ra>
// kernel: gamma_mulan_forward.1
= control target key start
LH: loop header
LB: loop body
LE: loop exit
PB: predicated region body
PF: predicated region fallthrough
CT: control target
= control target key end

     0   :  { %v183_v2 = vmov 0.0   ;;  %vm18_vm0 = vcmask 64512   ;;  %s231_s1 = inlined_call_operand.vmem [shape: f32[8,512], index: 1, kind: input, shape index: {}]   ;;  %s232_s0 = inlined_call_operand.vmem [shape: f32[8,8], index: 0, kind: input, shape index: {}]   ;;  %s233_s2 = inlined_call_operand.vmem [shape: f32[8,256], index: 2, kind: output, shape index: {0}]   ;;  %s234_s3 = inlined_call_operand.vmem [shape: f32[8,256], index: 3, kind: output, shape index: {1}]  }
   0x1   :  { %v17_v0 = vld [vmem:[%s231_s1 + $0x18] sm:$0xff]  ;;  %v16_v1 = vld [vmem:[%s231_s1 + $0x10] sm:$0xff]  ;;  %157 = vmatprep.mubr.f32.mxu1 %v183_v2  ;;  %v15_v3 = vld [vmem:[%s231_s1 + $0x8] sm:$0xff]  ;;  %86 = vmatprep.mubr.f32.mxu0 %v183_v2 }
   0x2   :  { %123 = vmatprep.subr.mxu1 %v17_v0  ;;  %52 = vmatprep.subr.mxu0 %v15_v3  ;;  %v13_v4 = vld [vmem:[%s232_s0] sm:$0xff] }
   0x3   :  { %v14_v5 = vld [vmem:[%s231_s1] sm:$0xff]  ;;  %124 = vmatpush1.msra.mxu1 %v16_v1 }
   0x4   :  { %53 = vmatpush1.msra.mxu0 %v14_v5  ;;  %181 = vmatmul.mubr.msk.f32.vlgmr.msra.gmra.mxu1 %vm18_vm0, %v13_v4 }
   0x5   :  { %180 = vmatmul.mubr.msk.f32.vlgmr.msra.gmra.mxu0 %vm18_vm0, %v13_v4 }
  0xc4   :  { %v159_v6 = vpop.f32.mrf.mxu1 }
  0xc5   :  { %v88_v7 = vpop.f32.mrf.mxu0  ;;  %v166_v8 = vmul.f32 %v159_v6, %v159_v6 }
  0xc6   :  { %164 = vst [vmem:[%s233_s2] sm:$0xff] %v88_v7  ;;  %v161_v9 = vpop.f32.mrf.mxu1 }
  0xc7   :  { %v90_v10 = vpop.f32.mrf.mxu0  ;;  %v168_v11 = vmax.f32 %v166_v8, 0.001  ;;  %v167_v12 = vmul.f32 %v161_v9, %v161_v9 }
  0xc8   :  { %165 = vst [vmem:[%s233_s2 + $0x8] sm:$0xff] %v90_v10 }
  0xc9   :  { %170 = vst [vmem:[%s234_s3] sm:$0xff] %v168_v11  ;;  %v169_v13 = vmax.f32 %v167_v12, 0.001 }
  0xcb   :  { %171 = vst [vmem:[%s234_s3 + $0x8] sm:$0xff] %v169_v13 }

</bundles_post_ra>
